<compile_context>
chip_gen: v6e
topology: v6e:2x2x1
jax: 0.10.0
libtpu: 0.0.40
codegen_flags: <defaults>
</compile_context>

<pallas_src>
import jax
import jax.numpy as jnp
from jax import lax
from jax.experimental import pallas as pl
from jax.experimental.pallas import tpu as pltpu


def _round_up(n, m):
    return ((n + m - 1) // m) * m


def _sdf_disc_kernel(x_ref, w1_ref, nb1_ref, w2_ref, c_ref, o_ref):
    # Layer 1 on the MXU: [tb, nz] @ [nz, h] -> f32.  x is cast to bf16 here
    # (in-kernel) so callers never pay an extra HBM pass for a wrapper cast.
    h = jnp.dot(x_ref[...].astype(jnp.bfloat16), w1_ref[...],
                preferred_element_type=jnp.float32)
    # Fused bias + ReLU:  relu(h + b1) == max(h, -b1) + b1; the trailing "+ b1"
    # is folded into the SMEM scalar c = b1 @ w2 + b2 (computed in the wrapper).
    h = jnp.maximum(h, nb1_ref[...]).astype(jnp.bfloat16)
    # Layer 2 (out_features == 1) in transposed form so the result is
    # lane-dense: contract (1, h) with (tb, h) over h -> (1, tb) on the MXU.
    logit = lax.dot_general(w2_ref[...], h, (((1,), (1,)), ((), ())),
                            preferred_element_type=jnp.float32)
    logit = logit + c_ref[0, 0]
    # Exact sigmoid: EUP exp + f32 divide.  exp(-z) -> inf for very negative z
    # still yields the correct 0 limit through the exact division.
    o_ref[...] = (1.0 / (1.0 + jnp.exp(-logit))).astype(o_ref.dtype)


def sdf_discriminator(x, w1, b1, w2, b2, *, block_b=8192):
    """x: [B, nz]; w1: [nz, h]; b1: [1, h] or [h]; w2: [h, 1] or [h]; b2: scalar-like.

    Returns sigmoid(relu(x @ w1 + b1) @ w2 + b2) with shape [B, 1], float32.
    On v5e/v6e (128 MiB VMEM) block_b can be raised to 16384-32768 for a few
    extra % of HBM roofline; the default 8192 is sized for v7x's 64 MiB VMEM.
    """
    B, nz = x.shape
    h_dim = w1.shape[-1]

    # ---- batch-tile selection --------------------------------------------
    # Keep >=8 grid steps when B is large enough (megacore on v7x wants >=2
    # per TC, pipelining wants a few more), never drop below a floor where the
    # ~0.35 us per-step overhead dominates, never exceed the VMEM budget
    # (block_b), and keep the tile a multiple of 128 (lane-dense output slab,
    # bf16 16-row sublane packing of the x tile).
    MIN_GRID_STEPS = 8
    TILE_FLOOR = 1024
    tb = max((B + MIN_GRID_STEPS - 1) // MIN_GRID_STEPS, TILE_FLOOR)
    tb = min(tb, block_b, B)
    tb = _round_up(max(tb, 1), 128)

    B_pad = _round_up(B, tb)
    if B_pad != B:
        # One extra pass over x; batches that are multiples of the tile avoid it.
        x = jnp.pad(x, ((0, B_pad - B), (0, 0)))

    # ---- parameters (tiny; resident in VMEM via constant index_maps) ------
    w1_bf = jnp.asarray(w1, jnp.bfloat16).reshape(nz, h_dim)
    b1_f32 = jnp.asarray(b1, jnp.float32).reshape(1, h_dim)
    w2_f32 = jnp.asarray(w2, jnp.float32).reshape(1, h_dim)   # (h,1)/(h,) -> lane-dense row
    nb1 = -b1_f32                                             # relu(h+b1) == max(h,-b1)+b1
    w2_bf = w2_f32.astype(jnp.bfloat16)
    c = (jnp.sum(b1_f32 * w2_f32)
         + jnp.asarray(b2, jnp.float32).reshape(())).reshape(1, 1)

    # ---- VMEM budget (accounts for TPU tile padding) -----------------------
    #   x block  : (tb, nz) lane-padded to 128 lanes, double-buffered
    #   out block: (1, tb) f32 sublane-padded to 8 rows, double-buffered
    #   h scratch: (tb, h_dim) f32 plus a bf16 copy for the 2nd matmul
    x_bytes = jnp.dtype(x.dtype).itemsize
    nz_pad = _round_up(nz, 128)
    h_pad = _round_up(h_dim, 128)
    est_vmem = tb * (2 * nz_pad * x_bytes + 2 * 8 * 4 + h_pad * (4 + 2))
    vmem_limit = int(max(32 * 1024 * 1024, 1.5 * est_vmem))

    grid = (B_pad // tb,)
    out = pl.pallas_call(
        _sdf_disc_kernel,
        out_shape=jax.ShapeDtypeStruct((1, B_pad), jnp.float32),
        grid=grid,
        in_specs=[
            # x: tiled over the batch grid axis; double-buffered by the pipeline.
            pl.BlockSpec((tb, nz), lambda i: (i, 0)),
            # Weights / biases: constant index_map -> stay resident in VMEM.
            pl.BlockSpec((nz, h_dim), lambda i: (0, 0)),
            pl.BlockSpec((1, h_dim), lambda i: (0, 0)),
            pl.BlockSpec((1, h_dim), lambda i: (0, 0)),
            # folded scalar bias lives in SMEM.
            pl.BlockSpec((1, 1), lambda i: (0, 0), memory_space=pltpu.SMEM),
        ],
        # Lane-dense (1, tb) output slab per grid step.
        out_specs=pl.BlockSpec((1, tb), lambda i: (0, i)),
        compiler_params=pltpu.CompilerParams(
            dimension_semantics=("parallel",),   # v7x: shard batch steps over 2 TCs
            vmem_limit_bytes=vmem_limit,
        ),
    )(x, w1_bf, nb1, w2_bf, c)

    # Lane-dense slab -> [B, 1]; padded columns (>= B) are sliced off here.
    return out.reshape(B_pad, 1)[:B]


def init_params(key, nz=32, h_dim=128, dtype=jnp.float32):
    """torch.nn.Linear default init: U[-1/sqrt(fan_in), +1/sqrt(fan_in)]."""
    k1, k2, k3, k4 = jax.random.split(key, 4)
    bound1 = 1.0 / jnp.sqrt(nz)
    bound2 = 1.0 / jnp.sqrt(h_dim)
    w1 = jax.random.uniform(k1, (nz, h_dim), dtype, -bound1, bound1)
    b1 = jax.random.uniform(k2, (1, h_dim), dtype, -bound1, bound1)
    w2 = jax.random.uniform(k3, (h_dim, 1), dtype, -bound2, bound2)
    b2 = jax.random.uniform(k4, (1, 1), dtype, -bound2, bound2)
    return w1, b1, w2, b2


def reference(x, w1, b1, w2, b2):
    h = jnp.maximum(x @ w1 + b1, 0.0)
    return jax.nn.sigmoid(h @ w2 + b2)


if __name__ == "__main__":
    nz, h_dim, batch = 32, 128, 8
    key = jax.random.PRNGKey(0)
    kx, kp = jax.random.split(key)

    x = jax.random.normal(kx, (batch, nz), dtype=jnp.float32)
    w1, b1, w2, b2 = init_params(kp, nz=nz, h_dim=h_dim)

    out = jax.block_until_ready(sdf_discriminator(x, w1, b1, w2, b2))
    ref = reference(x, w1, b1, w2, b2)
    assert out.shape == (batch, 1), out.shape
    # bf16 x/w1/h/w2 on the MXU; exact sigmoid -> tighter tolerance than v1.
    assert jnp.allclose(out, ref, atol=1e-2, rtol=0.0), (out, ref)

    # Exercise the multi-step grid, ragged-batch padding and lane-dense
    # output stitching path.
    batch2 = 300
    x2 = jax.random.normal(jax.random.PRNGKey(1), (batch2, nz), dtype=jnp.float32)
    out2 = jax.block_until_ready(sdf_discriminator(x2, w1, b1, w2, b2, block_b=128))
    ref2 = reference(x2, w1, b1, w2, b2)
    assert out2.shape == (batch2, 1), out2.shape
    assert jnp.allclose(out2, ref2, atol=1e-2, rtol=0.0), (out2, ref2)

    print("KERNEL_OK")
</pallas_src>

<mosaic_0001>
module attributes {stable_mosaic.version = 11 : i64} {
  func.func @_sdf_disc_kernel(%arg0: i32, %arg1: memref<128x32xf32, #tpu.memory_space<vmem>>, %arg2: memref<32x128xbf16, #tpu.memory_space<vmem>>, %arg3: memref<1x128xf32, #tpu.memory_space<vmem>>, %arg4: memref<1x128xbf16, #tpu.memory_space<vmem>>, %arg5: memref<1x1xf32, #tpu.memory_space<smem>>, %arg6: memref<1x128xf32, #tpu.memory_space<vmem>>) attributes {dimension_semantics = [#tpu.dimension_semantics<parallel>], iteration_bounds = array<i64: 1>, scalar_prefetch = 0 : i64, scratch_operands = 0 : i64, tpu.core_type = #tpu.core_type<tc>, window_params = [{transform_indices = @transform_0, window_bounds = array<i64: 128, 32>}, {pipeline_mode = #tpu.pipeline_mode<synchronous>, transform_indices = @transform_1, window_bounds = array<i64: 32, 128>}, {pipeline_mode = #tpu.pipeline_mode<synchronous>, transform_indices = @transform_2, window_bounds = array<i64: 1, 128>}, {pipeline_mode = #tpu.pipeline_mode<synchronous>, transform_indices = @transform_3, window_bounds = array<i64: 1, 128>}, {transform_indices = @transform_4, window_bounds = array<i64: 1, 1>}, {transform_indices = @transform_5, window_bounds = array<i64: 1, 128>}]} {
    %c0 = arith.constant 0 : index
    %c0_0 = arith.constant 0 : index
    %0 = vector.load %arg1[%c0, %c0_0] : memref<128x32xf32, #tpu.memory_space<vmem>>, vector<128x32xf32>
    %1 = arith.truncf %0 : vector<128x32xf32> to vector<128x32xbf16>
    %c0_1 = arith.constant 0 : index
    %c0_2 = arith.constant 0 : index
    %2 = vector.load %arg2[%c0_1, %c0_2] : memref<32x128xbf16, #tpu.memory_space<vmem>>, vector<32x128xbf16>
    %cst = arith.constant dense<0.000000e+00> : vector<128x128xf32>
    %3 = tpu.matmul %1, %2, %cst {dimension_numbers = #tpu.dot_dimension_numbers<[1], [0], [0], [1], [0, 0, 1, 1], [], []>} : vector<128x32xbf16>, vector<32x128xbf16>, vector<128x128xf32> -> vector<128x128xf32>
    %c0_3 = arith.constant 0 : index
    %c0_4 = arith.constant 0 : index
    %4 = vector.load %arg3[%c0_3, %c0_4] : memref<1x128xf32, #tpu.memory_space<vmem>>, vector<1x128xf32>
    %5 = vector.broadcast %4 : vector<1x128xf32> to vector<128x128xf32>
    %6 = arith.maximumf %3, %5 : vector<128x128xf32>
    %7 = arith.truncf %6 : vector<128x128xf32> to vector<128x128xbf16>
    %c0_5 = arith.constant 0 : index
    %c0_6 = arith.constant 0 : index
    %8 = vector.load %arg4[%c0_5, %c0_6] : memref<1x128xbf16, #tpu.memory_space<vmem>>, vector<1x128xbf16>
    %cst_7 = arith.constant dense<0.000000e+00> : vector<1x128xf32>
    %9 = tpu.matmul %8, %7, %cst_7 {dimension_numbers = #tpu.dot_dimension_numbers<[1], [1], [0], [0], [0, 0, 1, 0], [], []>} : vector<1x128xbf16>, vector<128x128xbf16>, vector<1x128xf32> -> vector<1x128xf32>
    %c0_8 = arith.constant 0 : index
    %c0_9 = arith.constant 0 : index
    %10 = memref.load %arg5[%c0_8, %c0_9] : memref<1x1xf32, #tpu.memory_space<smem>>
    %11 = vector.broadcast %10 : f32 to vector<1x128xf32>
    %12 = arith.addf %9, %11 : vector<1x128xf32>
    %cst_10 = arith.constant 0.000000e+00 : f32
    %13 = vector.broadcast %cst_10 : f32 to vector<1x128xf32>
    %14 = arith.subf %13, %12 : vector<1x128xf32>
    %15 = math.exp %14 : vector<1x128xf32>
    %cst_11 = arith.constant 1.000000e+00 : f32
    %16 = vector.broadcast %cst_11 : f32 to vector<1x128xf32>
    %17 = arith.addf %16, %15 : vector<1x128xf32>
    %cst_12 = arith.constant 1.000000e+00 : f32
    %18 = vector.broadcast %cst_12 : f32 to vector<1x128xf32>
    %19 = arith.divf %18, %17 : vector<1x128xf32>
    %c0_13 = arith.constant 0 : index
    %c0_14 = arith.constant 0 : index
    %20 = vector.load %arg6[%c0_13, %c0_14] : memref<1x128xf32, #tpu.memory_space<vmem>>, vector<1x128xf32>
    tpu.vector_store %arg6[%c0_13, %c0_14], %19 {strides = array<i32>} : memref<1x128xf32, #tpu.memory_space<vmem>>, vector<1x128xf32>,
    return
  }
  func.func @transform_0(%arg0: i32) -> (i32, i32) {
    %c0_i32 = arith.constant 0 : i32
    %c0_i32_0 = arith.constant 0 : i32
    return %arg0, %c0_i32 : i32, i32
  }
  func.func @transform_1(%arg0: i32) -> (i32, i32) {
    %c0_i32 = arith.constant 0 : i32
    %c0_i32_0 = arith.constant 0 : i32
    %c0_i32_1 = arith.constant 0 : i32
    return %c0_i32, %c0_i32_0 : i32, i32
  }
  func.func @transform_2(%arg0: i32) -> (i32, i32) {
    %c0_i32 = arith.constant 0 : i32
    %c0_i32_0 = arith.constant 0 : i32
    %c0_i32_1 = arith.constant 0 : i32
    return %c0_i32, %c0_i32_0 : i32, i32
  }
  func.func @transform_3(%arg0: i32) -> (i32, i32) {
    %c0_i32 = arith.constant 0 : i32
    %c0_i32_0 = arith.constant 0 : i32
    %c0_i32_1 = arith.constant 0 : i32
    return %c0_i32, %c0_i32_0 : i32, i32
  }
  func.func @transform_4(%arg0: i32) -> (i32, i32) {
    %c0_i32 = arith.constant 0 : i32
    %c0_i32_0 = arith.constant 0 : i32
    %c0_i32_1 = arith.constant 0 : i32
    return %c0_i32, %c0_i32_0 : i32, i32
  }
  func.func @transform_5(%arg0: i32) -> (i32, i32) {
    %c0_i32 = arith.constant 0 : i32
    %c0_i32_0 = arith.constant 0 : i32
    return %c0_i32, %arg0 : i32, i32
  }
}

</mosaic_0001>

<bundles_post_ra>
// kernel: tpu_custom_call.1
= control target key start
LH: loop header
LB: loop body
LE: loop exit
PB: predicated region body
PF: predicated region fallthrough
CT: control target
= control target key end

     0   :  { %vm63_vm0 = vcmask 261120   ;;  %s488_s0 = inlined_call_operand.vmem [shape: f32[128,32], index: 0, kind: input, shape index: {}]   ;;  %s489_s1 = inlined_call_operand.vmem [shape: bf16[32,128], index: 1, kind: input, shape index: {}]   ;;  %s490_s2 = inlined_call_operand.vmem [shape: f32[1,128], index: 2, kind: input, shape index: {}]   ;;  %s491_s3 = inlined_call_operand.vmem [shape: bf16[1,128], index: 3, kind: input, shape index: {}]   ;;  %s492_s4 = inlined_call_operand.<no memory space> [shape: f32[1,1], index: 4, kind: input, shape index: {}]   ;;  %s493_s5 = inlined_call_operand.hbm [shape: f32[1,128], index: 5, kind: output, shape index: {}]  }
   0x1   :  { %v353_v0 = vld [vmem:[%s489_s1 + $0x8] sm:$0xff]   ;;  %v354_v1 = vld [vmem:[%s489_s1] sm:$0xff]   ;;  %v25_v5 = vld [vmem:[%s488_s0 + $0x10] sm:$0xff] }
   0x2   :  { %310 = vmatprep.subr.bf16.mxu0 %v353_v0  ;;  %v23_v2 = vld [vmem:[%s488_s0] sm:$0xff]  ;;  %v24_v3 = vld [vmem:[%s488_s0 + $0x8] sm:$0xff]  ;;  %v26_v6 = vld [vmem:[%s488_s0 + $0x18] sm:$0xff] }
   0x3   :  { %311 = vmatpush3.bf16.msra.mxu0 %v353_v0  ;;  %v39_v4 = vpack.c.bf16 %v24_v3, %v23_v2  ;;  %v27_v7 = vld [vmem:[%s488_s0 + $0x20] sm:$0xff]  ;;  %v28_v8 = vld [vmem:[%s488_s0 + $0x28] sm:$0xff]  ;;  %v40_v9 = vpack.c.bf16 %v26_v6, %v25_v5 }
   0x4   :  { %312 = vmatprep.subr.bf16.mxu0 %v354_v1  ;;  %v41_v10 = vpack.c.bf16 %v28_v8, %v27_v7 }
   0x5   :  { %314 = vmatprep.mubr.msk.bf16.mxu0 %vm63_vm0, %v39_v4 }
   0x7   :  { %313 = vmatpush3.bf16.msra.mxu0 %v354_v1 }
   0x8   :  { %11 = vsyncpa [#allocation4], 0  ;;  %v29_v11 = vld [vmem:[%s488_s0 + $0x30] sm:$0xff]  ;;  %v30_v12 = vld [vmem:[%s488_s0 + $0x38] sm:$0xff]  ;;  %v381_v26 = vmov 0.0   ;;  %vm382_vm1 = vmmov 0   ;;  %v218_v5 = vstv %s492_s4 }
   0x9   :  { %v31_v13 = vld [vmem:[%s488_s0 + $0x40] sm:$0xff]  ;;  %v32_v14 = vld [vmem:[%s488_s0 + $0x48] sm:$0xff]  ;;  %v42_v15 = vpack.c.bf16 %v30_v12, %v29_v11  ;;  %v33_v17 = vld [vmem:[%s488_s0 + $0x50] sm:$0xff]  ;;  %330 = vmatprep.subr.bf16.mxu1 %v381_v26  ;;  %346 = vmatprep.mubr.msk.bf16.mxu1 %vm382_vm1, %v381_v26  ;;  %s383_s6 = smov [#allocation3]  }
   0xa   :  { %315 = vmatmul.mubr.msk.bf16.vlgmr.msra.gmra.mxu0 %vm63_vm0, %v40_v9  ;;  %v43_v16 = vpack.c.bf16 %v32_v14, %v31_v13  ;;  %v34_v18 = vld [vmem:[%s488_s0 + $0x58] sm:$0xff]  ;;  %v35_v19 = vld [vmem:[%s488_s0 + $0x60] sm:$0xff]  ;;  %v36_v20 = vld [vmem:[%s488_s0 + $0x68] sm:$0xff]  ;;  %s272_s7 = sshll.u32 %s383_s6, 4  ;;  %s273_s7 = int_to_ptr.vmem [resolvable:$true] %s272_s7 }
   0xb   :  { %318 = vmatprep.mubr.msk.bf16.mxu0 %vm63_vm0, %v41_v10  ;;  %v44_v21 = vpack.c.bf16 %v34_v18, %v33_v17  ;;  %v45_v22 = vpack.c.bf16 %v36_v20, %v35_v19  ;;  %v37_v23 = vld [vmem:[%s488_s0 + $0x70] sm:$0xff]  ;;  %v38_v24 = vld [vmem:[%s488_s0 + $0x78] sm:$0xff]  ;;  %v290_v28 = vld [vmem:[%s490_s2] ss:$0 sm:$0xff]  ;;  %s363_s8 = scalar_lea.vmem %s273_s7, 32  ;;  %p364_p1 = scmp.lt.s32.totalorder %s273_s7, %s273_s7 }
   0xc   :  { %v46_v25 = vpack.c.bf16 %v38_v24, %v37_v23  ;;  %v216_v4 = vld [vmem:[%s491_s3] sm:$0x1]  ;;  %s359_s3 = scalar_lea.vmem %s273_s7, 16 }
   0xd   :  { %p360_p0 = scmp.ne.s32.totalorder %s273_s7, %s359_s3  ;;  %p365_p2 = scmp.lt.s32.totalorder %s363_s8, %s359_s3 }
   0xf   :  { %p366_p3 = por %p365_p2, %p364_p1 }
  0x11   :  { %p367_p4 = pnand %p366_p3, %p360_p0 }
  0x12   :  { %319 = vmatmul.mubr.msk.bf16.gmra.mxu0 %vm63_vm0, %v42_v15 }
  0x13   :  { %322 = vmatprep.mubr.msk.bf16.mxu0 %vm63_vm0, %v43_v16 }
  0x1a   :  { %323 = vmatmul.mubr.msk.bf16.gmra.mxu0 %vm63_vm0, %v44_v21 }
  0x1b   :  { %326 = vmatprep.mubr.msk.bf16.mxu0 %vm63_vm0, %v45_v22 }
  0x22   :  { %327 = vmatmul.mubr.msk.bf16.gmra.mxu0 %vm63_vm0, %v46_v25 }
  0xca   :  { %v316_v27 = vpop.f32.mrf.mxu0 }
  0xcb   :  { %v194_v31 = vmax.f32 %v316_v27, %v290_v28 }
  0xcc   :  { %v122_v29 = vpop.f32.mrf.mxu0 }
  0xcd   :  { %v192_v34 = vmax.f32 %v122_v29, %v290_v28 }
  0xce   :  { %v317_v30 = vpop.f32.mrf.mxu0 }
  0xcf   :  { %v195_v32 = vmax.f32 %v317_v30, %v290_v28 }
  0xd0   :  { %v125_v33 = vpop.f32.mrf.mxu0 }
  0xd1   :  { %v209_v35 = vpack.c.bf16 %v195_v32, %v194_v31  ;;  %v193_v36 = vmax.f32 %v125_v33, %v290_v28 }
  0xd2   :  { %v320_v37 = vpop.f32.mrf.mxu0 }
  0xd3   :  { %v208_v38 = vpack.c.bf16 %v193_v36, %v192_v34  ;;  %v198_v63 = vmax.f32 %v320_v37, %v290_v28 }
  0xd4   :  { %v138_v39 = vpop.f32.mrf.mxu0 }
  0xd5   :  { %v196_v2 = vmax.f32 %v138_v39, %v290_v28 }
  0xd6   :  { %v321_v40 = vpop.f32.mrf.mxu0 }
  0xd7   :  { %v199_v62 = vmax.f32 %v321_v40, %v290_v28 }
  0xd8   :  { %v141_v41 = vpop.f32.mrf.mxu0 }
  0xd9   :  { %v211_v0 = vpack.c.bf16 %v199_v62, %v198_v63  ;;  %v197_v1 = vmax.f32 %v141_v41, %v290_v28 }
  0xda   :  { %v324_v42 = vpop.f32.mrf.mxu0 }
  0xdb   :  { %v202_v57 = vmax.f32 %v324_v42, %v290_v28  ;;  %v210_v3 = vpack.c.bf16 %v197_v1, %v196_v2 }
  0xdc   :  { %v154_v43 = vpop.f32.mrf.mxu0 }
  0xdd   :  { %v200_v60 = vmax.f32 %v154_v43, %v290_v28 }
  0xde   :  { %v325_v44 = vpop.f32.mrf.mxu0 }
  0xdf   :  { %v203_v56 = vmax.f32 %v325_v44, %v290_v28 }
  0xe0   :  { %v157_v45 = vpop.f32.mrf.mxu0 }
  0xe1   :  { %v213_v58 = vpack.c.bf16 %v203_v56, %v202_v57  ;;  %v201_v59 = vmax.f32 %v157_v45, %v290_v28 }
  0xe2   :  { %v328_v46 = vpop.f32.mrf.mxu0 }
  0xe3   :  { %v206_v49 = vmax.f32 %v328_v46, %v290_v28  ;;  %v212_v61 = vpack.c.bf16 %v201_v59, %v200_v60 }
  0xe4   :  { %v170_v47 = vpop.f32.mrf.mxu0 }
  0xe5   :  { %v204_v54 = vmax.f32 %v170_v47, %v290_v28 }
  0xe6   :  { %v329_v48 = vpop.f32.mrf.mxu0 }
  0xe7   :  { %v207_v50 = vmax.f32 %v329_v48, %v290_v28 }
  0xe8   :  { %v173_v52 = vpop.f32.mrf.mxu0 }
  0xe9   :  { %v215_v51 = vpack.c.bf16 %v207_v50, %v206_v49  ;;  %v205_v53 = vmax.f32 %v173_v52, %v290_v28 }
  0xeb   :  { %331 = vmatpush3.bf16.xpose.msra.mxu1 %v215_v51  ;;  %v214_v55 = vpack.c.bf16 %v205_v53, %v204_v54 }
  0xec   :  { %332 = vmatprep.subr.bf16.mxu1 %v381_v26 }
  0xf3   :  { %333 = vmatpush3.bf16.xpose.msra.mxu1 %v214_v55 }
  0xf4   :  { %334 = vmatprep.subr.bf16.mxu1 %v381_v26 }
  0xfb   :  { %335 = vmatpush3.bf16.xpose.msra.mxu1 %v213_v58 }
  0xfc   :  { %336 = vmatprep.subr.bf16.mxu1 %v381_v26 }
 0x103   :  { %337 = vmatpush3.bf16.xpose.msra.mxu1 %v212_v61 }
 0x104   :  { %338 = vmatprep.subr.bf16.mxu1 %v381_v26 }
 0x10b   :  { %339 = vmatpush3.bf16.xpose.msra.mxu1 %v211_v0 }
 0x10c   :  { %340 = vmatprep.subr.bf16.mxu1 %v381_v26 }
 0x113   :  { %341 = vmatpush3.bf16.xpose.msra.mxu1 %v210_v3 }
 0x114   :  { %342 = vmatprep.subr.bf16.mxu1 %v381_v26 }
 0x11b   :  { %343 = vmatpush3.bf16.xpose.msra.mxu1 %v209_v35 }
 0x11c   :  { %344 = vmatprep.subr.bf16.mxu1 %v381_v26 }
 0x123   :  { %345 = vmatpush3.bf16.xpose.msra.mxu1 %v208_v38 }
 0x12a   :  { %347 = vmatmul.mubr.bf16.vlgmr.msra.gmra.mxu1 %v216_v4 }
 0x1ea   :  { %v253_v6 = vpop.f32.mrf.mxu1 }
 0x1eb   :  { %v254_v7 = vadd.f32 %v253_v6, %v218_v5 }
 0x1ec   :  { %v348_v8 = vpop.f32.mrf.mxu1 }
 0x1ed   :  { %v259_v9 = vsub.f32 0.0, %v254_v7 }
 0x1ee   :  { %v256_v10 = vpop.f32.mrf.mxu1 }
 0x1ef   :  { %v260_v11 = vmul.f32 1.442695, %v259_v9 }
 0x1f0   :  { %v349_v12 = vpop.f32.mrf.mxu1 }
 0x1f1   :  { %355 = vpow2.f32 %v260_v11 }
 0x1fe   :  { %v356_v13 = vpop.eup %355 }
 0x1ff   :  { %v262_v14 = vadd.f32 1.0, %v356_v13 }
 0x201   :  { %357 = vrcp.f32 %v262_v14 }
 0x20e   :  { %v358_v15 = vpop.eup %357 }
 0x20f   :  { %265 = vst [vmem:[#allocation3] sm:$0x1] %v358_v15 }
 0x210   :  { %370 = shalt.err (!%p367_p4)
}
 0x211   :  { %275 = dma.vmem_to_hbm [thread:$0]  %s273_s7, 16, %s493_s5, [#allocation4]  }
 0x212   :  { %379 = dma.done.wait [#allocation4], 16  }
 0x213   :  { %380 = vsyncadd [#allocation4], 4294967280 }
 0x214   :  { %279 = vsyncpa [#allocation4], 1 }

</bundles_post_ra>
